<compile_context>
chip_gen: v7x
topology: tpu7x:2x2x1
jax: 0.10.0
libtpu: 0.0.40
codegen_flags: <defaults>
</compile_context>

<pallas_src>
import functools

import jax
import jax.numpy as jnp
import numpy as np
from jax.experimental import pallas as pl
from jax.experimental.pallas import tpu as pltpu

IN_FEATURES = 4
HIDDEN = 16
NUM_CLASSES = 3
FOLD = 8  # batch rows folded into each 128-lane column


def _round_up(n, m):
    return ((n + m - 1) // m) * m


def _cdiv(n, m):
    return (n + m - 1) // m


def mlp_kernel(x_ref, w1_ref, b1_ref, w2_ref, b2_ref, o_ref):
    # x_ref : [32, TM]  (bf16 or f32)   w1_ref: [128, 32] (same dtype as x)
    # b1_ref: [128, 1]  f32             w2_ref: [24, 128] f32
    # b2_ref: [24, 1]   f32             o_ref : [24, TM]  f32
    h = jnp.dot(w1_ref[...], x_ref[...], preferred_element_type=jnp.float32)
    h = jnp.maximum(h + b1_ref[...], 0.0)          # bias + ReLU, f32 on VPU
    o = jnp.dot(w2_ref[...], h, preferred_element_type=jnp.float32) + b2_ref[...]
    o_ref[...] = o.astype(o_ref.dtype)


def _fold_params(w1, b1, w2, b2, in_dtype):
    """Block-diagonal weights acting on FOLD batch rows per lane column."""
    H, C = w1.shape[0], w2.shape[0]
    eye = jnp.eye(FOLD, dtype=jnp.float32)
    w1_big = jnp.kron(eye, w1.astype(jnp.float32)).astype(in_dtype)      # [128, 32]
    b1_big = jnp.tile(b1.astype(jnp.float32), FOLD).reshape(FOLD * H, 1)  # [128, 1]
    w2_big = jnp.kron(eye, w2.astype(jnp.float32))                        # [24, 128]
    b2_big = jnp.tile(b2.astype(jnp.float32), FOLD).reshape(FOLD * C, 1)  # [24, 1]
    return w1_big, b1_big, w2_big, b2_big


def multiclass_net_forward_folded(x_fold, w1_big, b1_big, w2_big, b2_big,
                                  *, tm_max=8192):
    """Kernel on pre-folded layouts: x_fold [32, G_pad] -> logits [24, G_pad].

    This is the fusion-friendly serving entry point (no wrapper transposes).
    G_pad must be a multiple of 128.
    """
    F32 = jnp.float32
    HF, G_pad = x_fold.shape           # HF = FOLD * IN_FEATURES = 32
    H, C = HIDDEN, NUM_CLASSES

    tm_max = max(128, (tm_max // 128) * 128)   # keep 128-lane alignment
    # >= 2 grid steps whenever possible so the "parallel" axis feeds both
    # TensorCores on v7x (no-op on single-TC v5e/v6e).
    min_steps = 2 if G_pad >= 256 else 1
    n_steps = max(_cdiv(G_pad, tm_max), min_steps)
    TM = _round_up(_cdiv(G_pad, n_steps), 128)
    n_steps = _cdiv(G_pad, TM)

    return pl.pallas_call(
        mlp_kernel,
        out_shape=jax.ShapeDtypeStruct((FOLD * C, G_pad), F32),
        grid=(n_steps,),
        in_specs=[
            pl.BlockSpec((HF, TM), lambda i: (0, i)),            # x streams per step
            pl.BlockSpec((FOLD * H, HF), lambda i: (0, 0)),      # weights stay resident
            pl.BlockSpec((FOLD * H, 1), lambda i: (0, 0)),
            pl.BlockSpec((FOLD * C, FOLD * H), lambda i: (0, 0)),
            pl.BlockSpec((FOLD * C, 1), lambda i: (0, 0)),
        ],
        out_specs=pl.BlockSpec((FOLD * C, TM), lambda i: (0, i)),
        compiler_params=pltpu.CompilerParams(
            dimension_semantics=("parallel",),       # megacore split on v7x
            vmem_limit_bytes=32 * 1024 * 1024),      # headroom for TM=8192 on v5e
    )(x_fold, w1_big, b1_big, w2_big, b2_big)


@functools.partial(jax.jit, static_argnames=("tm_max", "use_bf16"))
def multiclass_net_forward(x, w1, b1, w2, b2, *, tm_max=8192, use_bf16=True):
    """Forward pass of MultiClassNet.

    x : [B, 4] float32
    w1: [16, 4], b1: [16]   (PyTorch nn.Linear layout)
    w2: [3, 16], b2: [3]
    returns logits [B, 3] float32.

    Note: with use_bf16=True the x/W1 MXU feed is bf16 (logits deviate from
    the f32 reference by up to ~1e-2 relative; fine for argmax). Pass
    use_bf16=False for an exact-f32 path.
    """
    B, F = x.shape
    assert F == IN_FEATURES
    C = w2.shape[0]
    in_dtype = jnp.bfloat16 if use_bf16 else jnp.float32

    tm_max = max(128, (tm_max // 128) * 128)
    G = _cdiv(B, FOLD)                          # folded lane columns needed
    min_steps = 2 if G > 128 else 1             # feed both v7x TCs when possible
    n_steps = max(_cdiv(G, tm_max), min_steps)
    TM = _round_up(_cdiv(G, n_steps), 128)      # bounds tail padding to ~1 tile/step
    G_pad = n_steps * TM
    B_pad = G_pad * FOLD

    # Fold 8 batch rows into each lane column: [B,4] -> [32, G_pad].
    # (Kept inside the same jit as the kernel so XLA can fuse the layout pass.)
    x_pad = jnp.pad(x, ((0, B_pad - B), (0, 0)))
    x_fold = jnp.transpose(x_pad.reshape(G_pad, FOLD * F)).astype(in_dtype)

    w1_big, b1_big, w2_big, b2_big = _fold_params(w1, b1, w2, b2, in_dtype)

    out_fold = multiclass_net_forward_folded(
        x_fold, w1_big, b1_big, w2_big, b2_big, tm_max=tm_max)

    # De-interleave: [24, G_pad] -> [G_pad, 24] -> [B_pad, 3] -> [B, 3].
    # Padded tail rows hold W2@relu(b1)+b2 junk and are sliced off here.
    logits = jnp.transpose(out_fold).reshape(B_pad, C)[:B]
    return logits


def init_params(key):
    """Deterministic init mimicking nn.Linear's U(-1/sqrt(fan_in), 1/sqrt(fan_in))."""
    k1, k2, k3, k4 = jax.random.split(key, 4)
    bound1 = 1.0 / np.sqrt(IN_FEATURES)
    w1 = jax.random.uniform(k1, (HIDDEN, IN_FEATURES), jnp.float32, -bound1, bound1)
    b1 = jax.random.uniform(k2, (HIDDEN,), jnp.float32, -bound1, bound1)
    bound2 = 1.0 / np.sqrt(HIDDEN)
    w2 = jax.random.uniform(k3, (NUM_CLASSES, HIDDEN), jnp.float32, -bound2, bound2)
    b2 = jax.random.uniform(k4, (NUM_CLASSES,), jnp.float32, -bound2, bound2)
    return w1, b1, w2, b2


def reference_forward(x, w1, b1, w2, b2):
    h = jnp.maximum(x @ w1.T + b1, 0.0)
    return h @ w2.T + b2


if __name__ == "__main__":
    key = jax.random.PRNGKey(0)
    pkey, xkey1, xkey2, xkey3 = jax.random.split(key, 4)
    w1, b1, w2, b2 = init_params(pkey)

    # 1) Small batch demo, consistent with fc1 = nn.Linear(4, 16).
    x_small = jax.random.normal(xkey1, (8, IN_FEATURES), jnp.float32)
    out_small = jax.block_until_ready(
        multiclass_net_forward(x_small, w1, b1, w2, b2))
    ref_small = reference_forward(x_small, w1, b1, w2, b2)
    # Tolerance covers the bf16 quantization of the x/W1 MXU streams.
    np.testing.assert_allclose(np.asarray(out_small), np.asarray(ref_small),
                               rtol=2e-2, atol=2e-2)

    # 2) Multi-step batch grid (3 steps) with a zero-padded tail tile and a
    #    batch that is not a multiple of the 8-row fold.
    x_big = jax.random.normal(xkey2, (3001, IN_FEATURES), jnp.float32)
    out_big = jax.block_until_ready(
        multiclass_net_forward(x_big, w1, b1, w2, b2, tm_max=128))
    ref_big = reference_forward(x_big, w1, b1, w2, b2)
    np.testing.assert_allclose(np.asarray(out_big), np.asarray(ref_big),
                               rtol=2e-2, atol=2e-2)

    # 3) Exact-f32 path (use_bf16=False), tight tolerance.
    x_f32 = jax.random.normal(xkey3, (64, IN_FEATURES), jnp.float32)
    out_f32 = jax.block_until_ready(
        multiclass_net_forward(x_f32, w1, b1, w2, b2, use_bf16=False))
    ref_f32 = reference_forward(x_f32, w1, b1, w2, b2)
    np.testing.assert_allclose(np.asarray(out_f32), np.asarray(ref_f32),
                               rtol=1e-4, atol=1e-4)

    print("KERNEL_OK")
</pallas_src>

<mosaic_0001>
module attributes {stable_mosaic.version = 11 : i64} {
  func.func @mlp_kernel(%arg0: i32, %arg1: memref<32x128xbf16, #tpu.memory_space<vmem>>, %arg2: memref<128x32xbf16, #tpu.memory_space<vmem>>, %arg3: memref<128x1xf32, #tpu.memory_space<vmem>>, %arg4: memref<24x128xf32, #tpu.memory_space<vmem>>, %arg5: memref<24x1xf32, #tpu.memory_space<vmem>>, %arg6: memref<24x128xf32, #tpu.memory_space<vmem>>) attributes {dimension_semantics = [#tpu.dimension_semantics<parallel>], iteration_bounds = array<i64: 1>, scalar_prefetch = 0 : i64, scratch_operands = 0 : i64, tpu.core_type = #tpu.core_type<tc>, window_params = [{transform_indices = @transform_0, window_bounds = array<i64: 32, 128>}, {pipeline_mode = #tpu.pipeline_mode<synchronous>, transform_indices = @transform_1, window_bounds = array<i64: 128, 32>}, {pipeline_mode = #tpu.pipeline_mode<synchronous>, transform_indices = @transform_2, window_bounds = array<i64: 128, 1>}, {pipeline_mode = #tpu.pipeline_mode<synchronous>, transform_indices = @transform_3, window_bounds = array<i64: 24, 128>}, {pipeline_mode = #tpu.pipeline_mode<synchronous>, transform_indices = @transform_4, window_bounds = array<i64: 24, 1>}, {transform_indices = @transform_5, window_bounds = array<i64: 24, 128>}]} {
    %c0 = arith.constant 0 : index
    %c0_0 = arith.constant 0 : index
    %0 = vector.load %arg2[%c0, %c0_0] : memref<128x32xbf16, #tpu.memory_space<vmem>>, vector<128x32xbf16>
    %c0_1 = arith.constant 0 : index
    %c0_2 = arith.constant 0 : index
    %1 = vector.load %arg1[%c0_1, %c0_2] : memref<32x128xbf16, #tpu.memory_space<vmem>>, vector<32x128xbf16>
    %cst = arith.constant dense<0.000000e+00> : vector<128x128xf32>
    %2 = tpu.matmul %0, %1, %cst {dimension_numbers = #tpu.dot_dimension_numbers<[1], [0], [0], [1], [0, 0, 1, 1], [], []>} : vector<128x32xbf16>, vector<32x128xbf16>, vector<128x128xf32> -> vector<128x128xf32>
    %c0_3 = arith.constant 0 : index
    %c0_4 = arith.constant 0 : index
    %3 = vector.load %arg3[%c0_3, %c0_4] : memref<128x1xf32, #tpu.memory_space<vmem>>, vector<128x1xf32>
    %4 = vector.broadcast %3 : vector<128x1xf32> to vector<128x128xf32>
    %5 = arith.addf %2, %4 : vector<128x128xf32>
    %cst_5 = arith.constant 0.000000e+00 : f32
    %6 = vector.broadcast %cst_5 : f32 to vector<128x128xf32>
    %7 = arith.maximumf %5, %6 : vector<128x128xf32>
    %c0_6 = arith.constant 0 : index
    %c0_7 = arith.constant 0 : index
    %8 = vector.load %arg4[%c0_6, %c0_7] : memref<24x128xf32, #tpu.memory_space<vmem>>, vector<24x128xf32>
    %cst_8 = arith.constant dense<0.000000e+00> : vector<24x128xf32>
    %9 = tpu.matmul %8, %7, %cst_8 {dimension_numbers = #tpu.dot_dimension_numbers<[1], [0], [0], [1], [0, 0, 1, 1], [], []>} : vector<24x128xf32>, vector<128x128xf32>, vector<24x128xf32> -> vector<24x128xf32>
    %c0_9 = arith.constant 0 : index
    %c0_10 = arith.constant 0 : index
    %10 = vector.load %arg5[%c0_9, %c0_10] : memref<24x1xf32, #tpu.memory_space<vmem>>, vector<24x1xf32>
    %11 = vector.broadcast %10 : vector<24x1xf32> to vector<24x128xf32>
    %12 = arith.addf %9, %11 : vector<24x128xf32>
    %c0_11 = arith.constant 0 : index
    %c0_12 = arith.constant 0 : index
    %13 = vector.load %arg6[%c0_11, %c0_12] : memref<24x128xf32, #tpu.memory_space<vmem>>, vector<24x128xf32>
    tpu.vector_store %arg6[%c0_11, %c0_12], %12 {strides = array<i32>} : memref<24x128xf32, #tpu.memory_space<vmem>>, vector<24x128xf32>,
    return
  }
  func.func @transform_0(%arg0: i32) -> (i32, i32) {
    %c0_i32 = arith.constant 0 : i32
    %c0_i32_0 = arith.constant 0 : i32
    return %c0_i32, %arg0 : i32, i32
  }
  func.func @transform_1(%arg0: i32) -> (i32, i32) {
    %c0_i32 = arith.constant 0 : i32
    %c0_i32_0 = arith.constant 0 : i32
    %c0_i32_1 = arith.constant 0 : i32
    return %c0_i32, %c0_i32_0 : i32, i32
  }
  func.func @transform_2(%arg0: i32) -> (i32, i32) {
    %c0_i32 = arith.constant 0 : i32
    %c0_i32_0 = arith.constant 0 : i32
    %c0_i32_1 = arith.constant 0 : i32
    return %c0_i32, %c0_i32_0 : i32, i32
  }
  func.func @transform_3(%arg0: i32) -> (i32, i32) {
    %c0_i32 = arith.constant 0 : i32
    %c0_i32_0 = arith.constant 0 : i32
    %c0_i32_1 = arith.constant 0 : i32
    return %c0_i32, %c0_i32_0 : i32, i32
  }
  func.func @transform_4(%arg0: i32) -> (i32, i32) {
    %c0_i32 = arith.constant 0 : i32
    %c0_i32_0 = arith.constant 0 : i32
    %c0_i32_1 = arith.constant 0 : i32
    return %c0_i32, %c0_i32_0 : i32, i32
  }
  func.func @transform_5(%arg0: i32) -> (i32, i32) {
    %c0_i32 = arith.constant 0 : i32
    %c0_i32_0 = arith.constant 0 : i32
    return %c0_i32, %arg0 : i32, i32
  }
}

</mosaic_0001>

<bundles_post_ra>
// kernel: tile.13
= control target key start
LH: loop header
LB: loop body
LE: loop exit
PB: predicated region body
PF: predicated region fallthrough
CT: control target
= control target key end

     0   :  { %s22_s0 = inlined_call_operand.vmem [shape: f32[16], index: 0, kind: input, shape index: {}]   ;;  %s23_s1 = inlined_call_operand.vmem [shape: f32[8,16], index: 1, kind: output, shape index: {}]  }
   0x1   :  { %v4_v0 = vld [vmem:[%s22_s0] ss:$0 sm:$0xff] }
   0x2   :  { %5 = vst [vmem:[%s23_s1] sm:$0xff] %v4_v0 }

// kernel: tile.0
= control target key start
LH: loop header
LB: loop body
LE: loop exit
PB: predicated region body
PF: predicated region fallthrough
CT: control target
= control target key end

     0   :  { %vm3_vm0 = vcmask 7168   ;;  %s264_s8 = smov 125   ;;  %s265_s17 = smov 126   ;;  %s547_s0 = inlined_call_operand.vmem [shape: f32[8,16], index: 0, kind: input, shape index: {}]   ;;  %s548_s1 = inlined_call_operand.vmem [shape: f32[128,1], index: 1, kind: output, shape index: {}]  }
   0x1   :  { %v8_v0 = vld [vmem:[%s547_s0] sm:$0xff]   ;;  %s263_s0 = smov 127   ;;  %s266_s18 = smov 124  }
   0x2   :  { %9 = vrot.lane.b32.xlu0 %v8_v0, %s263_s0  ;;  %33 = vrot.lane.b32.xlu1 %v8_v0, %s264_s8  ;;  %4 = vst.msk [vmem:[%s548_s1] ss:$16 sm:$0x3] %vm3_vm0, %v8_v0   ;;  %5 = vst.msk [vmem:[%s548_s1] ss:$16 sm:$0xc] %vm3_vm0, %v8_v0  }
   0x3   :  { %6 = vst.msk [vmem:[%s548_s1] ss:$16 sm:$0x30] %vm3_vm0, %v8_v0   ;;  %7 = vst.msk [vmem:[%s548_s1] ss:$16 sm:$0xc0] %vm3_vm0, %v8_v0  }
   0x4   :  { %s267_s19 = smov 123   ;;  %s268_s20 = smov 122  }
   0x5   :  { %s269_s21 = smov 121   ;;  %s270_s22 = smov 120  }
   0x6   :  { %21 = vrot.lane.b32.xlu0 %v8_v0, %s265_s17  ;;  %45 = vrot.lane.b32.xlu1 %v8_v0, %s266_s18  ;;  %s271_s23 = smov 119   ;;  %s272_s24 = smov 118  }
   0x7   :  { %s273_s25 = smov 117   ;;  %s274_s26 = smov 116  }
   0x8   :  { %s275_s27 = smov 115   ;;  %s276_s28 = smov 114  }
   0x9   :  { %s277_s29 = smov 113  }
   0xa   :  { %57 = vrot.lane.b32.xlu0 %v8_v0, %s267_s19  ;;  %69 = vrot.lane.b32.xlu1 %v8_v0, %s268_s20 }
   0xe   :  { %81 = vrot.lane.b32.xlu0 %v8_v0, %s269_s21  ;;  %93 = vrot.lane.b32.xlu1 %v8_v0, %s270_s22 }
  0x12   :  { %105 = vrot.lane.b32.xlu0 %v8_v0, %s271_s23  ;;  %117 = vrot.lane.b32.xlu1 %v8_v0, %s272_s24 }
  0x16   :  { %129 = vrot.lane.b32.xlu0 %v8_v0, %s273_s25  ;;  %141 = vrot.lane.b32.xlu1 %v8_v0, %s274_s26 }
  0x1a   :  { %153 = vrot.lane.b32.xlu0 %v8_v0, %s275_s27  ;;  %165 = vrot.lane.b32.xlu1 %v8_v0, %s276_s28 }
  0x1e   :  { %177 = vrot.lane.b32.xlu0 %v8_v0, %s277_s29 }
  0x74   :  { %v10_v1 = vpop.permute.xlu0 %9   ;;  %v34_v2 = vpop.permute.xlu1 %33  }
  0x75   :  { %188 = vst.msk [vmem:[%s548_s1 + $0x1] ss:$16 sm:$0x3] %vm3_vm0, %v10_v1   ;;  %189 = vst.msk [vmem:[%s548_s1 + $0x1] ss:$16 sm:$0xc] %vm3_vm0, %v10_v1  }
  0x76   :  { %190 = vst.msk [vmem:[%s548_s1 + $0x1] ss:$16 sm:$0x30] %vm3_vm0, %v10_v1   ;;  %191 = vst.msk [vmem:[%s548_s1 + $0x1] ss:$16 sm:$0xc0] %vm3_vm0, %v10_v1  }
  0x77   :  { %196 = vst.msk [vmem:[%s548_s1 + $0x3] ss:$16 sm:$0x3] %vm3_vm0, %v34_v2   ;;  %197 = vst.msk [vmem:[%s548_s1 + $0x3] ss:$16 sm:$0xc] %vm3_vm0, %v34_v2  }
  0x78   :  { %198 = vst.msk [vmem:[%s548_s1 + $0x3] ss:$16 sm:$0x30] %vm3_vm0, %v34_v2   ;;  %199 = vst.msk [vmem:[%s548_s1 + $0x3] ss:$16 sm:$0xc0] %vm3_vm0, %v34_v2   ;;  %v22_v3 = vpop.permute.xlu0 %21   ;;  %v46_v4 = vpop.permute.xlu1 %45  }
  0x79   :  { %192 = vst.msk [vmem:[%s548_s1 + $0x2] ss:$16 sm:$0x3] %vm3_vm0, %v22_v3   ;;  %193 = vst.msk [vmem:[%s548_s1 + $0x2] ss:$16 sm:$0xc] %vm3_vm0, %v22_v3  }
  0x7a   :  { %194 = vst.msk [vmem:[%s548_s1 + $0x2] ss:$16 sm:$0x30] %vm3_vm0, %v22_v3   ;;  %195 = vst.msk [vmem:[%s548_s1 + $0x2] ss:$16 sm:$0xc0] %vm3_vm0, %v22_v3  }
  0x7b   :  { %200 = vst.msk [vmem:[%s548_s1 + $0x4] ss:$16 sm:$0x3] %vm3_vm0, %v46_v4   ;;  %201 = vst.msk [vmem:[%s548_s1 + $0x4] ss:$16 sm:$0xc] %vm3_vm0, %v46_v4  }
  0x7c   :  { %202 = vst.msk [vmem:[%s548_s1 + $0x4] ss:$16 sm:$0x30] %vm3_vm0, %v46_v4   ;;  %203 = vst.msk [vmem:[%s548_s1 + $0x4] ss:$16 sm:$0xc0] %vm3_vm0, %v46_v4   ;;  %v58_v5 = vpop.permute.xlu0 %57   ;;  %v70_v6 = vpop.permute.xlu1 %69  }
  0x7d   :  { %204 = vst.msk [vmem:[%s548_s1 + $0x5] ss:$16 sm:$0x3] %vm3_vm0, %v58_v5   ;;  %205 = vst.msk [vmem:[%s548_s1 + $0x5] ss:$16 sm:$0xc] %vm3_vm0, %v58_v5  }
  0x7e   :  { %206 = vst.msk [vmem:[%s548_s1 + $0x5] ss:$16 sm:$0x30] %vm3_vm0, %v58_v5   ;;  %207 = vst.msk [vmem:[%s548_s1 + $0x5] ss:$16 sm:$0xc0] %vm3_vm0, %v58_v5  }
  0x7f   :  { %208 = vst.msk [vmem:[%s548_s1 + $0x6] ss:$16 sm:$0x3] %vm3_vm0, %v70_v6   ;;  %209 = vst.msk [vmem:[%s548_s1 + $0x6] ss:$16 sm:$0xc] %vm3_vm0, %v70_v6  }
  0x80   :  { %210 = vst.msk [vmem:[%s548_s1 + $0x6] ss:$16 sm:$0x30] %vm3_vm0, %v70_v6   ;;  %211 = vst.msk [vmem:[%s548_s1 + $0x6] ss:$16 sm:$0xc0] %vm3_vm0, %v70_v6   ;;  %v82_v7 = vpop.permute.xlu0 %81   ;;  %v94_v8 = vpop.permute.xlu1 %93  }
  0x81   :  { %212 = vst.msk [vmem:[%s548_s1 + $0x7] ss:$16 sm:$0x3] %vm3_vm0, %v82_v7   ;;  %213 = vst.msk [vmem:[%s548_s1 + $0x7] ss:$16 sm:$0xc] %vm3_vm0, %v82_v7  }
  0x82   :  { %214 = vst.msk [vmem:[%s548_s1 + $0x7] ss:$16 sm:$0x30] %vm3_vm0, %v82_v7   ;;  %215 = vst.msk [vmem:[%s548_s1 + $0x7] ss:$16 sm:$0xc0] %vm3_vm0, %v82_v7  }
  0x83   :  { %216 = vst.msk [vmem:[%s548_s1 + $0x8] ss:$16 sm:$0x3] %vm3_vm0, %v94_v8   ;;  %217 = vst.msk [vmem:[%s548_s1 + $0x8] ss:$16 sm:$0xc] %vm3_vm0, %v94_v8  }
  0x84   :  { %218 = vst.msk [vmem:[%s548_s1 + $0x8] ss:$16 sm:$0x30] %vm3_vm0, %v94_v8   ;;  %219 = vst.msk [vmem:[%s548_s1 + $0x8] ss:$16 sm:$0xc0] %vm3_vm0, %v94_v8   ;;  %v106_v9 = vpop.permute.xlu0 %105   ;;  %v118_v10 = vpop.permute.xlu1 %117  }
  0x85   :  { %220 = vst.msk [vmem:[%s548_s1 + $0x9] ss:$16 sm:$0x3] %vm3_vm0, %v106_v9   ;;  %221 = vst.msk [vmem:[%s548_s1 + $0x9] ss:$16 sm:$0xc] %vm3_vm0, %v106_v9  }
  0x86   :  { %222 = vst.msk [vmem:[%s548_s1 + $0x9] ss:$16 sm:$0x30] %vm3_vm0, %v106_v9   ;;  %223 = vst.msk [vmem:[%s548_s1 + $0x9] ss:$16 sm:$0xc0] %vm3_vm0, %v106_v9  }
  0x87   :  { %224 = vst.msk [vmem:[%s548_s1 + $0xa] ss:$16 sm:$0x3] %vm3_vm0, %v118_v10   ;;  %225 = vst.msk [vmem:[%s548_s1 + $0xa] ss:$16 sm:$0xc] %vm3_vm0, %v118_v10  }
  0x88   :  { %226 = vst.msk [vmem:[%s548_s1 + $0xa] ss:$16 sm:$0x30] %vm3_vm0, %v118_v10   ;;  %227 = vst.msk [vmem:[%s548_s1 + $0xa] ss:$16 sm:$0xc0] %vm3_vm0, %v118_v10   ;;  %v130_v11 = vpop.permute.xlu0 %129   ;;  %v142_v12 = vpop.permute.xlu1 %141  }
  0x89   :  { %228 = vst.msk [vmem:[%s548_s1 + $0xb] ss:$16 sm:$0x3] %vm3_vm0, %v130_v11   ;;  %229 = vst.msk [vmem:[%s548_s1 + $0xb] ss:$16 sm:$0xc] %vm3_vm0, %v130_v11  }
  0x8a   :  { %230 = vst.msk [vmem:[%s548_s1 + $0xb] ss:$16 sm:$0x30] %vm3_vm0, %v130_v11   ;;  %231 = vst.msk [vmem:[%s548_s1 + $0xb] ss:$16 sm:$0xc0] %vm3_vm0, %v130_v11  }
  0x8b   :  { %232 = vst.msk [vmem:[%s548_s1 + $0xc] ss:$16 sm:$0x3] %vm3_vm0, %v142_v12   ;;  %233 = vst.msk [vmem:[%s548_s1 + $0xc] ss:$16 sm:$0xc] %vm3_vm0, %v142_v12  }
  0x8c   :  { %234 = vst.msk [vmem:[%s548_s1 + $0xc] ss:$16 sm:$0x30] %vm3_vm0, %v142_v12   ;;  %235 = vst.msk [vmem:[%s548_s1 + $0xc] ss:$16 sm:$0xc0] %vm3_vm0, %v142_v12   ;;  %v154_v13 = vpop.permute.xlu0 %153   ;;  %v166_v14 = vpop.permute.xlu1 %165  }
  0x8d   :  { %236 = vst.msk [vmem:[%s548_s1 + $0xd] ss:$16 sm:$0x3] %vm3_vm0, %v154_v13   ;;  %237 = vst.msk [vmem:[%s548_s1 + $0xd] ss:$16 sm:$0xc] %vm3_vm0, %v154_v13  }
  0x8e   :  { %238 = vst.msk [vmem:[%s548_s1 + $0xd] ss:$16 sm:$0x30] %vm3_vm0, %v154_v13   ;;  %239 = vst.msk [vmem:[%s548_s1 + $0xd] ss:$16 sm:$0xc0] %vm3_vm0, %v154_v13  }
  0x8f   :  { %240 = vst.msk [vmem:[%s548_s1 + $0xe] ss:$16 sm:$0x3] %vm3_vm0, %v166_v14   ;;  %241 = vst.msk [vmem:[%s548_s1 + $0xe] ss:$16 sm:$0xc] %vm3_vm0, %v166_v14  }
  0x90   :  { %242 = vst.msk [vmem:[%s548_s1 + $0xe] ss:$16 sm:$0x30] %vm3_vm0, %v166_v14   ;;  %243 = vst.msk [vmem:[%s548_s1 + $0xe] ss:$16 sm:$0xc0] %vm3_vm0, %v166_v14   ;;  %v178_v15 = vpop.permute.xlu0 %177  }
  0x91   :  { %244 = vst.msk [vmem:[%s548_s1 + $0xf] ss:$16 sm:$0x3] %vm3_vm0, %v178_v15   ;;  %245 = vst.msk [vmem:[%s548_s1 + $0xf] ss:$16 sm:$0xc] %vm3_vm0, %v178_v15  }
  0x92   :  { %246 = vst.msk [vmem:[%s548_s1 + $0xf] ss:$16 sm:$0x30] %vm3_vm0, %v178_v15   ;;  %247 = vst.msk [vmem:[%s548_s1 + $0xf] ss:$16 sm:$0xc0] %vm3_vm0, %v178_v15  }

// kernel: tile.18
= control target key start
LH: loop header
LB: loop body
LE: loop exit
PB: predicated region body
PF: predicated region fallthrough
CT: control target
= control target key end

     0   :  { %s22_s0 = inlined_call_operand.vmem [shape: f32[3], index: 0, kind: input, shape index: {}]   ;;  %s23_s1 = inlined_call_operand.vmem [shape: f32[8,3], index: 1, kind: output, shape index: {}]  }
   0x1   :  { %v4_v0 = vld [vmem:[%s22_s0] ss:$0 sm:$0xff] }
   0x2   :  { %5 = vst [vmem:[%s23_s1] sm:$0xff] %v4_v0 }

// kernel: tile.1
= control target key start
LH: loop header
LB: loop body
LE: loop exit
PB: predicated region body
PF: predicated region fallthrough
CT: control target
= control target key end

     0   :  { %vm3_vm0 = vcmask 7168   ;;  %s22_s10 = smov 126   ;;  %s45_s0 = inlined_call_operand.vmem [shape: f32[8,3], index: 0, kind: input, shape index: {}]   ;;  %s46_s1 = inlined_call_operand.vmem [shape: f32[24,1], index: 1, kind: output, shape index: {}]  }
   0x1   :  { %v5_v0 = vld [vmem:[%s45_s0] sm:$0xff]   ;;  %s21_s0 = smov 127  }
   0x2   :  { %6 = vrot.lane.b32.xlu0 %v5_v0, %s21_s0  ;;  %4 = vst.msk [vmem:[%s46_s1] ss:$3 sm:$0xff] %vm3_vm0, %v5_v0  }
   0x6   :  { %12 = vrot.lane.b32.xlu0 %v5_v0, %s22_s10 }
  0x74   :  { %v7_v1 = vpop.permute.xlu0 %6  }
  0x75   :  { %17 = vst.msk [vmem:[%s46_s1 + $0x1] ss:$3 sm:$0xff] %vm3_vm0, %v7_v1  }
  0x78   :  { %v13_v2 = vpop.permute.xlu0 %12  }
  0x79   :  { %18 = vst.msk [vmem:[%s46_s1 + $0x2] ss:$3 sm:$0xff] %vm3_vm0, %v13_v2  }

// kernel: multiclass_net_forward.1
= control target key start
LH: loop header
LB: loop body
LE: loop exit
PB: predicated region body
PF: predicated region fallthrough
CT: control target
= control target key end

     0   :  { %v583_v1 = vmov 0   ;;  %vm189_vm0 = vcmask 261120   ;;  %v584_v30 = vmov 0.0|0.0   ;;  %vm585_vm1 = vmmov 0   ;;  %s744_s0 = inlined_call_operand.vmem [shape: bf16[32,128], index: 0, kind: input, shape index: {}]   ;;  %s745_s1 = inlined_call_operand.vmem [shape: bf16[128,32], index: 1, kind: input, shape index: {}]   ;;  %s746_s2 = inlined_call_operand.vmem [shape: f32[128,1], index: 2, kind: input, shape index: {}]   ;;  %s747_s4 = inlined_call_operand.vmem [shape: f32[24,1], index: 4, kind: input, shape index: {}]   ;;  %s748_s3 = inlined_call_operand.vmem [shape: f32[24,128], index: 3, kind: input, shape index: {}]   ;;  %s749_s5 = inlined_call_operand.vmem [shape: f32[24,128], index: 5, kind: output, shape index: {}]  }
   0x1   :  { %v573_v0 = vld [vmem:[%s744_s0] sm:$0xff]   ;;  %571 = vset.pattern.permute.xlu0 %v583_v1  ;;  %572 = vset.pattern.permute.xlu1 %v583_v1  ;;  %v574_v2 = vld [vmem:[%s744_s0 + $0x8] sm:$0xff]   ;;  %v577_v5 = vld [vmem:[%s745_s1 + $0x10] sm:$0xff]   ;;  %v586_v31 = vmov 0.0  }
   0x2   :  { %482 = vmatprep.subr.bf16.mxu0 %v573_v0  ;;  %v575_v3 = vld [vmem:[%s745_s1] sm:$0xff]   ;;  %v576_v4 = vld [vmem:[%s745_s1 + $0x8] sm:$0xff]   ;;  %v43_v7 = vld [vmem:[%s746_s2 + $0x10] sm:$0xff]  ;;  %543 = vmatprep.subr.bf16.mxu1 %v584_v30 }
   0x3   :  { %483 = vmatpush3.bf16.msra.mxu0 %v573_v0  ;;  %486 = vmatprep.mubr.msk.bf16.mxu0 %vm189_vm0, %v575_v3  ;;  %v41_v6 = vld [vmem:[%s746_s2] sm:$0xff]  ;;  %v42_v8 = vld [vmem:[%s746_s2 + $0x8] sm:$0xff]  ;;  %v44_v9 = vld [vmem:[%s746_s2 + $0x18] sm:$0xff] }
   0x4   :  { %484 = vmatprep.subr.bf16.mxu0 %v574_v2  ;;  %59 = vperm.xlu0 %571, %v41_v6   ;;  %v578_v10 = vld [vmem:[%s745_s1 + $0x18] sm:$0xff]   ;;  %v579_v11 = vld [vmem:[%s745_s1 + $0x20] sm:$0xff]   ;;  %v46_v13 = vld [vmem:[%s746_s2 + $0x28] sm:$0xff] }
   0x5   :  { %69 = vperm.xlu1 %572, %v43_v7   ;;  %v45_v12 = vld [vmem:[%s746_s2 + $0x20] sm:$0xff]  ;;  %v47_v14 = vld [vmem:[%s746_s2 + $0x30] sm:$0xff]  ;;  %v48_v15 = vld [vmem:[%s746_s2 + $0x38] sm:$0xff]  ;;  %534 = vmatprep.mubr.msk.f32.mxu1 %vm585_vm1, %v586_v31 }
   0x6   :  { %v580_v16 = vld [vmem:[%s745_s1 + $0x28] sm:$0xff]   ;;  %v581_v17 = vld [vmem:[%s745_s1 + $0x30] sm:$0xff]   ;;  %v49_v18 = vld [vmem:[%s746_s2 + $0x40] sm:$0xff] }
   0x7   :  { %485 = vmatpush3.bf16.msra.mxu0 %v574_v2  ;;  %v50_v19 = vld [vmem:[%s746_s2 + $0x48] sm:$0xff]  ;;  %v51_v20 = vld [vmem:[%s746_s2 + $0x50] sm:$0xff]  ;;  %v52_v21 = vld [vmem:[%s746_s2 + $0x58] sm:$0xff] }
   0x8   :  { %64 = vperm.xlu0 %571, %v42_v8   ;;  %v582_v22 = vld [vmem:[%s745_s1 + $0x38] sm:$0xff]   ;;  %v53_v23 = vld [vmem:[%s746_s2 + $0x60] sm:$0xff]  ;;  %v54_v24 = vld [vmem:[%s746_s2 + $0x68] sm:$0xff] }
   0x9   :  { %74 = vperm.xlu1 %572, %v44_v9   ;;  %v55_v25 = vld [vmem:[%s746_s2 + $0x70] sm:$0xff]  ;;  %v56_v26 = vld [vmem:[%s746_s2 + $0x78] sm:$0xff]  ;;  %v330_v27 = vld [vmem:[%s747_s4] sm:$0xff] }
   0xa   :  { %487 = vmatmul.mubr.msk.bf16.vlgmr.msra.gmra.mrb[0].mxu0 %vm189_vm0, %v576_v4  ;;  %v331_v28 = vld [vmem:[%s747_s4 + $0x8] sm:$0xff]  ;;  %v332_v29 = vld [vmem:[%s747_s4 + $0x10] sm:$0xff] }
   0xb   :  { %490 = vmatprep.mubr.msk.bf16.mxu0 %vm189_vm0, %v577_v5 }
   0xc   :  { %79 = vperm.xlu0 %571, %v45_v12  }
   0xd   :  { %84 = vperm.xlu1 %572, %v46_v13  }
  0x10   :  { %89 = vperm.xlu0 %571, %v47_v14  }
  0x11   :  { %94 = vperm.xlu1 %572, %v48_v15  }
  0x12   :  { %491 = vmatmul.mubr.msk.bf16.gmra.mrb[4].mxu0 %vm189_vm0, %v578_v10 }
  0x13   :  { %494 = vmatprep.mubr.msk.bf16.mxu0 %vm189_vm0, %v579_v11 }
  0x14   :  { %99 = vperm.xlu0 %571, %v49_v18  }
  0x15   :  { %104 = vperm.xlu1 %572, %v50_v19  }
  0x18   :  { %109 = vperm.xlu0 %571, %v51_v20  }
  0x19   :  { %114 = vperm.xlu1 %572, %v52_v21  }
  0x1a   :  { %495 = vmatmul.mubr.msk.bf16.gmra.mrb[8].mxu0 %vm189_vm0, %v580_v16 }
  0x1b   :  { %498 = vmatprep.mubr.msk.bf16.mxu0 %vm189_vm0, %v581_v17 }
  0x1c   :  { %119 = vperm.xlu0 %571, %v53_v23  }
  0x1d   :  { %124 = vperm.xlu1 %572, %v54_v24  }
  0x20   :  { %129 = vperm.xlu0 %571, %v55_v25  }
  0x21   :  { %134 = vperm.xlu1 %572, %v56_v26  }
  0x22   :  { %499 = vmatmul.mubr.msk.bf16.gmra.mrb[12].mxu0 %vm189_vm0, %v582_v22 }
  0x24   :  { %335 = vperm.xlu0 %571, %v330_v27  }
  0x25   :  { %340 = vperm.xlu1 %572, %v331_v28  }
  0x28   :  { %345 = vperm.xlu0 %571, %v332_v29  }
  0x83   :  { %v60_v32 = vpop.permute.xlu0 %59 }
  0x84   :  { %v70_v33 = vpop.permute.xlu1 %69 }
  0x87   :  { %v65_v34 = vpop.permute.xlu0 %64 }
  0x88   :  { %v75_v35 = vpop.permute.xlu1 %74 }
  0x8b   :  { %v80_v36 = vpop.permute.xlu0 %79 }
  0x8c   :  { %v85_v37 = vpop.permute.xlu1 %84 }
  0x8f   :  { %v90_v38 = vpop.permute.xlu0 %89 }
  0x90   :  { %v95_v42 = vpop.permute.xlu1 %94 }
  0x93   :  { %v100_v50 = vpop.permute.xlu0 %99 }
  0x94   :  { %v105_v54 = vpop.permute.xlu1 %104 }
  0x97   :  { %v110_v63 = vpop.permute.xlu0 %109 }
  0x98   :  { %v115_v3 = vpop.permute.xlu1 %114 }
  0x9b   :  { %v120_v11 = vpop.permute.xlu0 %119 }
  0x9c   :  { %v125_v16 = vpop.permute.xlu1 %124 }
  0x9f   :  { %v130_v23 = vpop.permute.xlu0 %129 }
  0xa0   :  { %v135_v28 = vpop.permute.xlu1 %134 }
  0xdd   :  { %v488_v39 = vpop.f32.mrb[0].mxu0 }
  0xde   :  { %v257_v40 = vadd.f32 %v488_v39, %v70_v33  ;;  %v248_v41 = vpop.f32.mrb[1].mxu0 }
  0xdf   :  { %v249_v43 = vadd.f32 %v248_v41, %v60_v32  ;;  %v489_v44 = vpop.f32.mrb[2].mxu0 }
  0xe0   :  { %v260_v45 = vadd.f32 %v489_v44, %v75_v35  ;;  %v251_v46 = vpop.f32.mrb[3].mxu0  ;;  %v313_v48 = vmax.f32 %v257_v40, 0.0  ;;  %v336_v44 = vpop.permute.xlu0 %335 }
  0xe1   :  { %v252_v47 = vadd.f32 %v251_v46, %v65_v34  ;;  %v311_v51 = vmax.f32 %v249_v43, 0.0  ;;  %v328_v43 = vld [vmem:[%s748_s3 + $0x8] sm:$0xff] }
  0xe2   :  { %v314_v49 = vmax.f32 %v260_v45, 0.0 }
  0xe3   :  { %v312_v52 = vmax.f32 %v252_v47, 0.0 }
  0xe4   :  { %v547_v53 = vpack.c.bf16 %v314_v49, %v313_v48  ;;  %v341_v48 = vpop.permute.xlu1 %340 }
  0xe5   :  { %v492_v55 = vpop.f32.mrb[4].mxu0  ;;  %v544_v56 = vpack.c.bf16 %v312_v52, %v311_v51 }
  0xe6   :  { %v273_v57 = vadd.f32 %v492_v55, %v90_v38  ;;  %v264_v58 = vpop.f32.mrb[5].mxu0 }
  0xe7   :  { %v265_v59 = vadd.f32 %v264_v58, %v80_v36  ;;  %v493_v60 = vpop.f32.mrb[6].mxu0  ;;  %545 = vmatpush3.bf16.msra.mxu1 %v544_v56 }
  0xe8   :  { %v276_v61 = vadd.f32 %v493_v60, %v95_v42  ;;  %v267_v62 = vpop.f32.mrb[7].mxu0  ;;  %546 = vmatprep.subr.bf16.mxu1 %v584_v30  ;;  %v317_v1 = vmax.f32 %v273_v57, 0.0  ;;  %v327_v42 = vld [vmem:[%s748_s3] sm:$0xff] }
  0xe9   :  { %v268_v0 = vadd.f32 %v267_v62, %v85_v37  ;;  %v315_v4 = vmax.f32 %v265_v59, 0.0 }
  0xea   :  { %v318_v2 = vmax.f32 %v276_v61, 0.0 }
  0xeb   :  { %v316_v5 = vmax.f32 %v268_v0, 0.0  ;;  %548 = vmatpush3.bf16.msra.mxu1 %v547_v53 }
  0xec   :  { %v553_v6 = vpack.c.bf16 %v318_v2, %v317_v1  ;;  %549 = vmatprep.subr.bf16.mxu1 %v584_v30 }
  0xed   :  { %v550_v7 = vpack.c.bf16 %v316_v5, %v315_v4  ;;  %v496_v8 = vpop.f32.mrb[8].mxu0 }
  0xee   :  { %v289_v9 = vadd.f32 %v496_v8, %v110_v63  ;;  %v280_v10 = vpop.f32.mrb[9].mxu0 }
  0xef   :  { %v281_v12 = vadd.f32 %v280_v10, %v100_v50  ;;  %v497_v13 = vpop.f32.mrb[10].mxu0  ;;  %551 = vmatpush3.bf16.msra.mxu1 %v550_v7 }
  0xf0   :  { %v292_v14 = vadd.f32 %v497_v13, %v115_v3  ;;  %v283_v15 = vpop.f32.mrb[11].mxu0  ;;  %552 = vmatprep.subr.bf16.mxu1 %v584_v30  ;;  %v321_v18 = vmax.f32 %v289_v9, 0.0 }
  0xf1   :  { %v284_v17 = vadd.f32 %v283_v15, %v105_v54  ;;  %v319_v20 = vmax.f32 %v281_v12, 0.0 }
  0xf2   :  { %v322_v19 = vmax.f32 %v292_v14, 0.0 }
  0xf3   :  { %v320_v21 = vmax.f32 %v284_v17, 0.0  ;;  %554 = vmatpush3.bf16.msra.mxu1 %v553_v6 }
  0xf4   :  { %v559_v22 = vpack.c.bf16 %v322_v19, %v321_v18  ;;  %555 = vmatprep.subr.bf16.mxu1 %v584_v30 }
  0xf5   :  { %v556_v24 = vpack.c.bf16 %v320_v21, %v319_v20  ;;  %v500_v25 = vpop.f32.mrb[12].mxu0 }
  0xf6   :  { %v305_v26 = vadd.f32 %v500_v25, %v130_v23  ;;  %v296_v27 = vpop.f32.mrb[13].mxu0 }
  0xf7   :  { %v297_v29 = vadd.f32 %v296_v27, %v120_v11  ;;  %v501_v32 = vpop.f32.mrb[14].mxu0  ;;  %557 = vmatpush3.bf16.msra.mxu1 %v556_v24 }
  0xf8   :  { %v308_v33 = vadd.f32 %v501_v32, %v135_v28  ;;  %v299_v34 = vpop.f32.mrb[15].mxu0  ;;  %558 = vmatprep.subr.bf16.mxu1 %v584_v30  ;;  %v325_v36 = vmax.f32 %v305_v26, 0.0 }
  0xf9   :  { %v300_v35 = vadd.f32 %v299_v34, %v125_v16  ;;  %v323_v38 = vmax.f32 %v297_v29, 0.0 }
  0xfa   :  { %v326_v37 = vmax.f32 %v308_v33, 0.0 }
  0xfb   :  { %v324_v39 = vmax.f32 %v300_v35, 0.0  ;;  %560 = vmatpush3.bf16.msra.mxu1 %v559_v22 }
  0xfc   :  { %v565_v40 = vpack.c.bf16 %v326_v37, %v325_v36  ;;  %561 = vmatprep.subr.bf16.mxu1 %v584_v30 }
  0xfd   :  { %v562_v41 = vpack.c.bf16 %v324_v39, %v323_v38 }
  0xff   :  { %563 = vmatpush3.bf16.msra.mxu1 %v562_v41 }
 0x100   :  { %564 = vmatprep.subr.bf16.mxu1 %v584_v30  ;;  %v329_v30 = vld [vmem:[%s748_s3 + $0x10] sm:$0xff] }
 0x103   :  { %566 = vmatpush3.bf16.msra.mxu1 %v565_v40 }
 0x106   :  { %535 = vmatmul.mubr.f32.vlgmr.msra.gmra.mrb[0].mxu1 %v327_v42 }
 0x107   :  { %537 = vmatprep.mubr.msk.f32.mxu1 %vm585_vm1, %v586_v31 }
 0x10a   :  { %538 = vmatmul.mubr.f32.gmra.mrb[2].mxu1 %v328_v43 }
 0x10b   :  { %540 = vmatprep.mubr.msk.f32.mxu1 %vm585_vm1, %v586_v31  ;;  %v346_v31 = vpop.permute.xlu0 %345 }
 0x10e   :  { %541 = vmatmul.mubr.f32.gmra.mrb[4].mxu1 %v329_v30 }
 0x1d9   :  { %v414_v45 = vpop.f32.mrb[0].mxu1 }
 0x1da   :  { %v415_v46 = vadd.f32 %v414_v45, %v336_v44  ;;  %v536_v47 = vpop.f32.mrb[1].mxu1 }
 0x1dc   :  { %428 = vst [vmem:[%s749_s5] sm:$0xff] %v415_v46 }
 0x1dd   :  { %v419_v49 = vpop.f32.mrb[2].mxu1 }
 0x1de   :  { %v420_v50 = vadd.f32 %v419_v49, %v341_v48  ;;  %v539_v51 = vpop.f32.mrb[3].mxu1 }
 0x1e0   :  { %429 = vst [vmem:[%s749_s5 + $0x8] sm:$0xff] %v420_v50 }
 0x1e1   :  { %v424_v52 = vpop.f32.mrb[4].mxu1 }
 0x1e2   :  { %v425_v53 = vadd.f32 %v424_v52, %v346_v31  ;;  %v542_v54 = vpop.f32.mrb[5].mxu1 }
 0x1e4   :  { %430 = vst [vmem:[%s749_s5 + $0x10] sm:$0xff] %v425_v53 }

</bundles_post_ra>
